<compile_context>
chip_gen: v6e
topology: v6e:2x2x1
jax: 0.10.0
libtpu: 0.0.40
codegen_flags: <defaults>
</compile_context>

<pallas_src>
import jax
import jax.numpy as jnp
from jax.experimental import pallas as pl
from jax.experimental.pallas import tpu as pltpu


# ----------------------------- Pallas kernel ------------------------------

def _qnet_kernel(x_ref, w_ref, b_ref, o_ref):
    # One MXU matmul (f32 accumulation) + a single bias add; all in VMEM.
    acc = jnp.dot(x_ref[...], w_ref[...], preferred_element_type=jnp.float32)
    o_ref[...] = (acc + b_ref[...]).astype(o_ref.dtype)


# ------------------------------ wrapper ------------------------------------

def qnet_forward(inputs, w, b, *, row_tile=512):
    """q = inputs @ w + b  — matches torch.nn.Linear(2*E, skill_dim).

    inputs: (..., 2*entity_embed_dim)
    w:      (2*entity_embed_dim, skill_dim)   (already transposed vs. torch)
    b:      (skill_dim,)
    """
    lead = inputs.shape[:-1]
    K = inputs.shape[-1]
    N = w.shape[1]
    out_dtype = inputs.dtype

    x = inputs.reshape(-1, K).astype(jnp.float32)
    M = x.shape[0]
    w = w.astype(jnp.float32)
    b2d = b.reshape(1, N).astype(jnp.float32)     # bias hoisted to a (1, N) block

    if M <= row_tile:
        # Single grid-less invocation: whole operands resident in VMEM,
        # zero grid-loop / pipeline overhead.
        vmem = pltpu.MemorySpace.VMEM
        out = pl.pallas_call(
            _qnet_kernel,
            out_shape=jax.ShapeDtypeStruct((M, N), out_dtype),
            in_specs=[
                pl.BlockSpec(memory_space=vmem),
                pl.BlockSpec(memory_space=vmem),
                pl.BlockSpec(memory_space=vmem),
            ],
            out_specs=pl.BlockSpec(memory_space=vmem),
        )(x, w, b2d)
    else:
        # Large-M path: row-tiled pipeline.  W / bias keep constant index_maps
        # (stay resident); ragged final block handled by Pallas (no pad copy).
        tm = row_tile
        out = pl.pallas_call(
            _qnet_kernel,
            out_shape=jax.ShapeDtypeStruct((M, N), out_dtype),
            grid=(pl.cdiv(M, tm),),
            in_specs=[
                pl.BlockSpec((tm, K), lambda i: (i, 0)),
                pl.BlockSpec((K, N), lambda i: (0, 0)),
                pl.BlockSpec((1, N), lambda i: (0, 0)),
            ],
            out_specs=pl.BlockSpec((tm, N), lambda i: (i, 0)),
            compiler_params=pltpu.CompilerParams(
                dimension_semantics=("parallel",)),
        )(x, w, b2d)

    return out.reshape(*lead, N)


# ------------------------------- main --------------------------------------

if __name__ == "__main__":
    # Small shapes consistent with the module: entity_embed_dim=32 → in=64,
    # skill_dim=8, inputs of shape (batch=2, n_agents=3, 2*E).
    entity_embed_dim = 32
    skill_dim = 8
    bs, n_agents = 2, 3
    in_dim = 2 * entity_embed_dim

    key = jax.random.PRNGKey(0)
    k1, k2, k3, k4 = jax.random.split(key, 4)
    inputs = jax.random.normal(k1, (bs, n_agents, in_dim), jnp.float32)
    w = 0.1 * jax.random.normal(k2, (in_dim, skill_dim), jnp.float32)
    b = 0.1 * jax.random.normal(k3, (skill_dim,), jnp.float32)

    # --- small-M (grid-less, single invocation) path ---
    q = qnet_forward(inputs, w, b)
    q = jax.block_until_ready(q)
    ref = inputs.reshape(-1, in_dim) @ w + b
    assert q.shape == (bs, n_agents, skill_dim)
    assert jnp.allclose(q.reshape(-1, skill_dim), ref, atol=1e-5, rtol=1e-5)

    # --- large-M (row-tiled, ragged final block) path ---
    big_inputs = jax.random.normal(k4, (1000, in_dim), jnp.float32)
    q_big = qnet_forward(big_inputs, w, b)
    q_big = jax.block_until_ready(q_big)
    ref_big = big_inputs @ w + b
    assert q_big.shape == (1000, skill_dim)
    assert jnp.allclose(q_big, ref_big, atol=1e-5, rtol=1e-5)

    print("KERNEL_OK")
</pallas_src>

<mosaic_0001>
module attributes {stable_mosaic.version = 11 : i64} {
  func.func @_qnet_kernel(%arg0: memref<6x64xf32, #tpu.memory_space<vmem>>, %arg1: memref<64x8xf32, #tpu.memory_space<vmem>>, %arg2: memref<1x8xf32, #tpu.memory_space<vmem>>, %arg3: memref<6x8xf32, #tpu.memory_space<vmem>>) attributes {dimension_semantics = [], scalar_prefetch = 0 : i64, scratch_operands = 0 : i64, tpu.core_type = #tpu.core_type<tc>} {
    %c0 = arith.constant 0 : index
    %c0_0 = arith.constant 0 : index
    %0 = vector.load %arg0[%c0, %c0_0] : memref<6x64xf32, #tpu.memory_space<vmem>>, vector<6x64xf32>
    %c0_1 = arith.constant 0 : index
    %c0_2 = arith.constant 0 : index
    %1 = vector.load %arg1[%c0_1, %c0_2] : memref<64x8xf32, #tpu.memory_space<vmem>>, vector<64x8xf32>
    %cst = arith.constant dense<0.000000e+00> : vector<6x8xf32>
    %2 = tpu.matmul %0, %1, %cst {dimension_numbers = #tpu.dot_dimension_numbers<[1], [0], [0], [1], [0, 0, 1, 1], [], []>} : vector<6x64xf32>, vector<64x8xf32>, vector<6x8xf32> -> vector<6x8xf32>
    %c0_3 = arith.constant 0 : index
    %c0_4 = arith.constant 0 : index
    %3 = vector.load %arg2[%c0_3, %c0_4] : memref<1x8xf32, #tpu.memory_space<vmem>>, vector<1x8xf32>
    %4 = vector.broadcast %3 : vector<1x8xf32> to vector<6x8xf32>
    %5 = arith.addf %2, %4 : vector<6x8xf32>
    %c0_5 = arith.constant 0 : index
    %c0_6 = arith.constant 0 : index
    %6 = vector.load %arg3[%c0_5, %c0_6] : memref<6x8xf32, #tpu.memory_space<vmem>>, vector<6x8xf32>
    tpu.vector_store %arg3[%c0_5, %c0_6], %5 {strides = array<i32>} : memref<6x8xf32, #tpu.memory_space<vmem>>, vector<6x8xf32>,
    return
  }
}

</mosaic_0001>

<bundles_post_ra>
// kernel: tpu_custom_call.1
= control target key start
LH: loop header
LB: loop body
LE: loop exit
PB: predicated region body
PF: predicated region fallthrough
CT: control target
= control target key end

     0   :  { %v176_v1 = vmov 0.0   ;;  %vm177_vm0 = vmmov 0   ;;  %s232_s0 = inlined_call_operand.vmem [shape: f32[6,64], index: 0, kind: input, shape index: {}]   ;;  %s233_s1 = inlined_call_operand.vmem [shape: f32[64,8], index: 1, kind: input, shape index: {}]   ;;  %s234_s2 = inlined_call_operand.vmem [shape: f32[1,8], index: 2, kind: input, shape index: {}]   ;;  %s235_s3 = inlined_call_operand.hbm [shape: f32[6,8], index: 3, kind: output, shape index: {}]  }
   0x1   :  { %v23_v0 = vld [vmem:[%s233_s1 + $0x38] sm:$0xff]  ;;  %132 = vmatprep.subr.mxu0 %v176_v1  ;;  %v22_v2 = vld [vmem:[%s233_s1 + $0x30] sm:$0xff]  ;;  %148 = vmatprep.mubr.msk.f32.mxu0 %vm177_vm0, %v176_v1  ;;  %v21_v3 = vld [vmem:[%s233_s1 + $0x28] sm:$0xff] }
   0x2   :  { %133 = vmatpush3.msra.mxu0 %v23_v0 }
   0x3   :  { %134 = vmatprep.subr.mxu0 %v176_v1 }
   0x4   :  { %8 = vsyncpa [#allocation3], 0  ;;  %135 = vmatpush3.msra.mxu0 %v22_v2  ;;  %v20_v4 = vld [vmem:[%s233_s1 + $0x20] sm:$0xff]  ;;  %v19_v5 = vld [vmem:[%s233_s1 + $0x18] sm:$0xff]  ;;  %vm31_vm1 = vcmask 523264   ;;  %s178_s5 = smov [#allocation2]  }
   0x5   :  { %136 = vmatprep.subr.mxu0 %v176_v1  ;;  %v18_v6 = vld [vmem:[%s233_s1 + $0x10] sm:$0xff]  ;;  %v17_v7 = vld [vmem:[%s233_s1 + $0x8] sm:$0xff]  ;;  %v16_v8 = vld [vmem:[%s233_s1] sm:$0xff]  ;;  %s113_s6 = sshll.u32 %s178_s5, 4  ;;  %vm105_vm2 = vcmask 62464   ;;  %s114_s6 = int_to_ptr.vmem [resolvable:$true] %s113_s6 }
   0x6   :  { %137 = vmatpush3.msra.mxu0 %v21_v3  ;;  %v15_v9 = vld [vmem:[%s232_s0] sm:$0x3f]  ;;  %s154_s1 = scalar_lea.vmem %s114_s6, 128  ;;  %p159_p1 = scmp.lt.s32.totalorder %s114_s6, %s114_s6 }
   0x7   :  { %138 = vmatprep.subr.mxu0 %v176_v1  ;;  %v121_v10 = vld [vmem:[%s234_s2] ss:$0 sm:$0xff]  ;;  %p155_p0 = scmp.ne.s32.totalorder %s114_s6, %s154_s1  ;;  %p160_p2 = scmp.lt.s32.totalorder %s154_s1, %s154_s1 }
   0x8   :  { %139 = vmatpush3.msra.mxu0 %v20_v4 }
   0x9   :  { %140 = vmatprep.subr.mxu0 %v176_v1  ;;  %p161_p3 = por %p160_p2, %p159_p1 }
   0xa   :  { %141 = vmatpush3.msra.mxu0 %v19_v5 }
   0xb   :  { %142 = vmatprep.subr.mxu0 %v176_v1  ;;  %p162_p4 = pnand %p161_p3, %p155_p0 }
   0xc   :  { %143 = vmatpush3.msra.mxu0 %v18_v6 }
   0xd   :  { %144 = vmatprep.subr.mxu0 %v176_v1 }
   0xe   :  { %145 = vmatpush3.msra.mxu0 %v17_v7 }
   0xf   :  { %146 = vmatprep.subr.mxu0 %v176_v1 }
  0x10   :  { %147 = vmatpush3.msra.mxu0 %v16_v8 }
  0x11   :  { %149 = vmatmul.mubr.msk.f32.vlgmr.msra.gmra.mxu0 %vm31_vm1, %v15_v9 }
  0xd1   :  { %v101_v11 = vpop.f32.mrf.mxu0 }
  0xd2   :  { %v102_v12 = vadd.f32 %v121_v10, %v101_v11 }
  0xd3   :  { %v150_v13 = vpop.f32.mrf.mxu0 }
  0xd4   :  { %106 = vst.msk [vmem:[#allocation2] sm:$0x3f] %vm105_vm2, %v102_v12 }
  0xd5   :  { %165 = shalt.err (!%p162_p4)
}
  0xd6   :  { %116 = dma.vmem_to_hbm [thread:$0]  %s114_s6, 128, %s235_s3, [#allocation3]  }
  0xd7   :  { %174 = dma.done.wait [#allocation3], 128  }
  0xd8   :  { %175 = vsyncadd [#allocation3], 4294967168 }
  0xd9   :  { %120 = vsyncpa [#allocation3], 1 }

</bundles_post_ra>
